<compile_context>
chip_gen: v5e
topology: v5e:2x2
jax: 0.10.0
libtpu: 0.0.40
codegen_flags: <defaults>
</compile_context>

<pallas_src>
import jax
import jax.numpy as jnp
from jax.experimental import pallas as pl
from jax.experimental.pallas import tpu as pltpu

LANE = 128


def _round_up(x, m):
    return ((x + m - 1) // m) * m


def _pad2d(x, rows, cols):
    return jnp.pad(x, ((0, rows - x.shape[0]), (0, cols - x.shape[1])))


def _vmem_budget_bytes():
    """Generation-aware VMEM budget: ~3/4 of physical (96 MiB v5e/v6e, 48 MiB v7x)."""
    try:
        cap = pltpu.get_tpu_info().vmem_capacity_bytes
    except Exception:
        cap = 128 * 1024 * 1024
    return int(cap) * 3 // 4


def _choose_tiles(n):
    """Pick (n_pad, tm, tk) so the aggregate always runs on big, evenly dividing tiles."""
    if n <= 1024:
        n_pad = _round_up(max(n, LANE), LANE)
        return n_pad, n_pad, n_pad
    # Pad N up to the reduction-tile width so 1024 x 2048 tiles divide evenly.
    n_pad = _round_up(n, 2048)
    return n_pad, 1024, 2048


# ---------------------------------------------------------------------------
# Kernel 1: dense feature transform  XW = row_scale * (X @ W)   (row-tiled).
# ---------------------------------------------------------------------------
def _transform_kernel(x_ref, w_ref, s_ref, o_ref):
    xw = jnp.dot(x_ref[...], w_ref[...], preferred_element_type=jnp.float32)
    o_ref[...] = (s_ref[...] * xw).astype(o_ref.dtype)


def dense_transform(x, w, row_scale, *, out_dtype, vmem_limit):
    n, f_in = x.shape
    f_out = w.shape[1]
    tm = n if n <= 1024 else 1024
    grid_spec = pltpu.PrefetchScalarGridSpec(
        num_scalar_prefetch=0,
        grid=(n // tm,),
        in_specs=[
            pl.BlockSpec((tm, f_in), lambda i: (i, 0)),
            pl.BlockSpec((f_in, f_out), lambda i: (0, 0)),
            pl.BlockSpec((tm, 1), lambda i: (i, 0)),
        ],
        out_specs=pl.BlockSpec((tm, f_out), lambda i: (i, 0)),
    )
    return pl.pallas_call(
        _transform_kernel,
        out_shape=jax.ShapeDtypeStruct((n, f_out), out_dtype),
        grid_spec=grid_spec,
        compiler_params=pltpu.CompilerParams(
            dimension_semantics=("parallel",),
            vmem_limit_bytes=vmem_limit,
        ),
        cost_estimate=pl.CostEstimate(
            flops=2 * n * f_in * f_out,
            transcendentals=0,
            bytes_accessed=(
                n * f_in * x.dtype.itemsize
                + f_in * f_out * w.dtype.itemsize
                + n * 4
                + n * f_out * jnp.dtype(out_dtype).itemsize
            ),
        ),
    )(x, w, row_scale)


# ---------------------------------------------------------------------------
# Kernel 2: graph aggregation  OUT = d^{-1/2} * (A @ XW) + b  (optional ReLU),
# gridded over (row tiles, reduction tiles) with an f32 accumulator.
# A arrives as exact binary int8 and is upconverted in-VMEM (VPU work hidden
# under the HBM-bound A stream).
# ---------------------------------------------------------------------------
def _make_aggregate_kernel(apply_relu, xw_resident, tk):
    def kernel(a_ref, xw_ref, d_ref, b_ref, o_ref, acc_ref):
        k = pl.program_id(1)

        @pl.when(k == 0)
        def _():
            acc_ref[...] = jnp.zeros_like(acc_ref)

        if xw_resident:
            off = pl.multiple_of(k * tk, tk)
            xw = xw_ref[pl.ds(off, tk), :]
        else:
            xw = xw_ref[...]
        a_bf16 = a_ref[...].astype(jnp.float32).astype(jnp.bfloat16)
        acc_ref[...] += jnp.dot(a_bf16, xw, preferred_element_type=jnp.float32)

        @pl.when(k == pl.num_programs(1) - 1)
        def _():
            h = d_ref[...] * acc_ref[...] + b_ref[...]
            if apply_relu:
                h = jnp.maximum(h, 0.0)
            o_ref[...] = h.astype(o_ref.dtype)

    return kernel


def aggregate(a, xw, d_is, b, *, apply_relu, tm, tk, out_dtype, vmem_limit):
    n = a.shape[0]
    f = xw.shape[1]
    num_row_tiles = n // tm
    num_k_tiles = n // tk

    # Keep all of XW VMEM-resident when it fits a conservative slice of the
    # budget (accounts for A double-buffers, accumulator, output buffers).
    xw_bytes = n * f * xw.dtype.itemsize
    xw_resident = xw_bytes <= vmem_limit // 6
    if xw_resident:
        xw_spec = pl.BlockSpec((n, f), lambda i, k: (0, 0))
        xw_reads = 1
    else:
        xw_spec = pl.BlockSpec((tk, f), lambda i, k: (k, 0))
        xw_reads = num_row_tiles

    grid_spec = pltpu.PrefetchScalarGridSpec(
        num_scalar_prefetch=0,
        grid=(num_row_tiles, num_k_tiles),
        in_specs=[
            pl.BlockSpec((tm, tk), lambda i, k: (i, k)),   # A tile (int8, streamed)
            xw_spec,                                       # XW (resident or streamed)
            pl.BlockSpec((tm, 1), lambda i, k: (i, 0)),    # d^{-1/2} row scale
            pl.BlockSpec((1, f), lambda i, k: (0, 0)),     # bias
        ],
        out_specs=pl.BlockSpec((tm, f), lambda i, k: (i, 0)),
        scratch_shapes=[pltpu.VMEM((tm, f), jnp.float32)],
    )
    return pl.pallas_call(
        _make_aggregate_kernel(apply_relu, xw_resident, tk),
        out_shape=jax.ShapeDtypeStruct((n, f), out_dtype),
        grid_spec=grid_spec,
        compiler_params=pltpu.CompilerParams(
            dimension_semantics=("parallel", "arbitrary"),
            vmem_limit_bytes=vmem_limit,
        ),
        cost_estimate=pl.CostEstimate(
            flops=2 * n * n * f,
            transcendentals=0,
            bytes_accessed=(
                n * n * a.dtype.itemsize          # binary A stream (dominant)
                + xw_reads * xw_bytes             # XW read(s)
                + n * f * jnp.dtype(out_dtype).itemsize
                + n * 4                           # d^{-1/2}
                + f * 4                           # bias
            ),
        ),
    )(a, xw, d_is, b)


# ---------------------------------------------------------------------------
# Full GCN forward.  Takes the BINARY adjacency (with self-loops) and builds
# the symmetric normalization internally (factored into row scales).
# ---------------------------------------------------------------------------
@jax.jit
def gcn_forward(adj, x, w1, b1, w2, b2):
    n, in_feats = x.shape
    h_feats = w1.shape[1]
    out_feats = w2.shape[1]

    vmem_limit = _vmem_budget_bytes()
    n_pad, tm, tk = _choose_tiles(n)
    fi = _round_up(in_feats, LANE)
    fh = _round_up(h_feats, LANE)
    fo = _round_up(out_feats, LANE)

    adj_f = adj.astype(jnp.float32)
    deg = jnp.sum(adj_f, axis=1)
    # Padded / isolated rows get scale 0 so zero-padding can never produce NaNs.
    d_is = jnp.where(deg > 0.0, jnp.maximum(deg, 1.0) ** -0.5, 0.0)

    a_p = _pad2d(adj_f, n_pad, n_pad).astype(jnp.int8)        # exact binary A
    d_p = jnp.pad(d_is, (0, n_pad - n)).reshape(n_pad, 1).astype(jnp.float32)
    x_p = _pad2d(x, n_pad, fi).astype(jnp.bfloat16)
    w1_p = _pad2d(w1, fi, fh).astype(jnp.bfloat16)
    w2_p = _pad2d(w2, fh, fo).astype(jnp.bfloat16)
    b1_p = _pad2d(b1.reshape(1, -1), 1, fh).astype(jnp.float32)
    b2_p = _pad2d(b2.reshape(1, -1), 1, fo).astype(jnp.float32)

    # Layer 1: H1 = relu( D^{-1/2} A D^{-1/2} (X W1) + b1 )
    xw1 = dense_transform(x_p, w1_p, d_p, out_dtype=jnp.bfloat16,
                          vmem_limit=vmem_limit)               # = D^{-1/2} X W1
    h1 = aggregate(a_p, xw1, d_p, b1_p, apply_relu=True, tm=tm, tk=tk,
                   out_dtype=jnp.bfloat16, vmem_limit=vmem_limit)
    # Layer 2: OUT = D^{-1/2} A D^{-1/2} (H1 W2) + b2
    hw2 = dense_transform(h1, w2_p, d_p, out_dtype=jnp.bfloat16,
                          vmem_limit=vmem_limit)               # = D^{-1/2} H1 W2
    out = aggregate(a_p, hw2, d_p, b2_p, apply_relu=False, tm=tm, tk=tk,
                    out_dtype=jnp.float32, vmem_limit=vmem_limit)

    return out[:n, :out_feats]


# ---------------------------------------------------------------------------
# Graph construction + pure-JAX reference.
# ---------------------------------------------------------------------------
def build_adjacency(key, n):
    """Random undirected binary graph with self-loops."""
    bits = jax.random.bernoulli(key, p=0.3, shape=(n, n)).astype(jnp.float32)
    a = jnp.maximum(bits, bits.T)                        # symmetric
    a = jnp.maximum(a, jnp.eye(n, dtype=jnp.float32))    # self-loops
    return a


def reference_forward(adj, x, w1, b1, w2, b2):
    deg = jnp.sum(adj, axis=1)
    d_is = jnp.where(deg > 0.0, deg ** -0.5, 0.0)
    a_norm = adj * d_is[:, None] * d_is[None, :]
    h1 = jnp.maximum(a_norm @ (x @ w1) + b1, 0.0)
    return a_norm @ (h1 @ w2) + b2


def _run_case(seed, num_nodes, in_feats, h_feats, out_feats):
    key = jax.random.PRNGKey(seed)
    k_adj, k_x, k_w1, k_w2, k_b1, k_b2 = jax.random.split(key, 6)

    adj = build_adjacency(k_adj, num_nodes)
    x = jax.random.normal(k_x, (num_nodes, in_feats), dtype=jnp.float32)

    lim1 = (6.0 / (in_feats + h_feats)) ** 0.5
    lim2 = (6.0 / (h_feats + out_feats)) ** 0.5
    w1 = jax.random.uniform(k_w1, (in_feats, h_feats), jnp.float32, -lim1, lim1)
    w2 = jax.random.uniform(k_w2, (h_feats, out_feats), jnp.float32, -lim2, lim2)
    b1 = 0.1 * jax.random.normal(k_b1, (1, h_feats), dtype=jnp.float32)
    b2 = 0.1 * jax.random.normal(k_b2, (1, out_feats), dtype=jnp.float32)

    out = jax.block_until_ready(gcn_forward(adj, x, w1, b1, w2, b2))
    ref = reference_forward(adj, x, w1, b1, w2, b2)

    assert out.shape == (num_nodes, out_feats)
    # bf16 features / weights / H1 with exact int8 A and f32 accumulation.
    assert jnp.allclose(out, ref, atol=5e-2, rtol=5e-2), float(
        jnp.max(jnp.abs(out - ref))
    )


if __name__ == "__main__":
    # Small case (single 128-tile) and a case exercising row/feature padding.
    _run_case(seed=0, num_nodes=16, in_feats=8, h_feats=32, out_feats=4)
    _run_case(seed=1, num_nodes=200, in_feats=12, h_feats=48, out_feats=6)
    print("KERNEL_OK")
</pallas_src>

<mosaic_0001>
module attributes {stable_mosaic.version = 11 : i64} {
  func.func @_transform_kernel(%arg0: i32, %arg1: memref<128x128xbf16, #tpu.memory_space<vmem>>, %arg2: memref<128x128xbf16, #tpu.memory_space<vmem>>, %arg3: memref<128x1xf32, #tpu.memory_space<vmem>>, %arg4: memref<128x128xbf16, #tpu.memory_space<vmem>>) attributes {dimension_semantics = [#tpu.dimension_semantics<parallel>], iteration_bounds = array<i64: 1>, scalar_prefetch = 0 : i64, scratch_operands = 0 : i64, tpu.core_type = #tpu.core_type<tc>, window_params = [{transform_indices = @transform_0, window_bounds = array<i64: 128, 128>}, {pipeline_mode = #tpu.pipeline_mode<synchronous>, transform_indices = @transform_1, window_bounds = array<i64: 128, 128>}, {transform_indices = @transform_2, window_bounds = array<i64: 128, 1>}, {transform_indices = @transform_3, window_bounds = array<i64: 128, 128>}]} {
    %c0 = arith.constant 0 : index
    %c0_0 = arith.constant 0 : index
    %0 = vector.load %arg1[%c0, %c0_0] : memref<128x128xbf16, #tpu.memory_space<vmem>>, vector<128x128xbf16>
    %c0_1 = arith.constant 0 : index
    %c0_2 = arith.constant 0 : index
    %1 = vector.load %arg2[%c0_1, %c0_2] : memref<128x128xbf16, #tpu.memory_space<vmem>>, vector<128x128xbf16>
    %cst = arith.constant dense<0.000000e+00> : vector<128x128xf32>
    %2 = tpu.matmul %0, %1, %cst {dimension_numbers = #tpu.dot_dimension_numbers<[1], [0], [0], [1], [0, 0, 1, 1], [], []>} : vector<128x128xbf16>, vector<128x128xbf16>, vector<128x128xf32> -> vector<128x128xf32>
    %c0_3 = arith.constant 0 : index
    %c0_4 = arith.constant 0 : index
    %3 = vector.load %arg3[%c0_3, %c0_4] : memref<128x1xf32, #tpu.memory_space<vmem>>, vector<128x1xf32>
    %4 = vector.broadcast %3 : vector<128x1xf32> to vector<128x128xf32>
    %5 = arith.mulf %4, %2 : vector<128x128xf32>
    %6 = arith.truncf %5 : vector<128x128xf32> to vector<128x128xbf16>
    %c0_5 = arith.constant 0 : index
    %c0_6 = arith.constant 0 : index
    %7 = vector.load %arg4[%c0_5, %c0_6] : memref<128x128xbf16, #tpu.memory_space<vmem>>, vector<128x128xbf16>
    tpu.vector_store %arg4[%c0_5, %c0_6], %6 {strides = array<i32>} : memref<128x128xbf16, #tpu.memory_space<vmem>>, vector<128x128xbf16>,
    return
  }
  func.func @transform_0(%arg0: i32) -> (i32, i32) {
    %c0_i32 = arith.constant 0 : i32
    %c0_i32_0 = arith.constant 0 : i32
    return %arg0, %c0_i32 : i32, i32
  }
  func.func @transform_1(%arg0: i32) -> (i32, i32) {
    %c0_i32 = arith.constant 0 : i32
    %c0_i32_0 = arith.constant 0 : i32
    %c0_i32_1 = arith.constant 0 : i32
    return %c0_i32, %c0_i32_0 : i32, i32
  }
  func.func @transform_2(%arg0: i32) -> (i32, i32) {
    %c0_i32 = arith.constant 0 : i32
    %c0_i32_0 = arith.constant 0 : i32
    return %arg0, %c0_i32 : i32, i32
  }
  func.func @transform_3(%arg0: i32) -> (i32, i32) {
    %c0_i32 = arith.constant 0 : i32
    %c0_i32_0 = arith.constant 0 : i32
    return %arg0, %c0_i32 : i32, i32
  }
}

module attributes {stable_mosaic.version = 11 : i64} {
  func.func @kernel(%arg0: i32, %arg1: i32, %arg2: memref<128x128xi8, #tpu.memory_space<vmem>>, %arg3: memref<128x128xbf16, #tpu.memory_space<vmem>>, %arg4: memref<128x1xf32, #tpu.memory_space<vmem>>, %arg5: memref<1x128xf32, #tpu.memory_space<vmem>>, %arg6: memref<128x128xbf16, #tpu.memory_space<vmem>>, %arg7: memref<128x128xf32, #tpu.memory_space<vmem>>) attributes {dimension_semantics = [#tpu.dimension_semantics<parallel>, #tpu.dimension_semantics<arbitrary>], iteration_bounds = array<i64: 1, 1>, scalar_prefetch = 0 : i64, scratch_operands = 1 : i64, tpu.core_type = #tpu.core_type<tc>, window_params = [{transform_indices = @transform_0, window_bounds = array<i64: 128, 128>}, {pipeline_mode = #tpu.pipeline_mode<synchronous>, transform_indices = @transform_1, window_bounds = array<i64: 128, 128>}, {transform_indices = @transform_2, window_bounds = array<i64: 128, 1>}, {pipeline_mode = #tpu.pipeline_mode<synchronous>, transform_indices = @transform_3, window_bounds = array<i64: 1, 128>}, {transform_indices = @transform_4, window_bounds = array<i64: 128, 128>}]} {
    %c0_i32 = arith.constant 0 : i32
    %0 = arith.cmpi eq, %arg1, %c0_i32 : i32
    %1 = arith.extui %0 : i1 to i32
    %c0_i32_0 = arith.constant 0 : i32
    %2 = arith.cmpi ne, %1, %c0_i32_0 : i32
    scf.if %2 {
      %cst_9 = arith.constant 0.000000e+00 : f32
      %17 = vector.broadcast %cst_9 : f32 to vector<128x128xf32>
      %c0_10 = arith.constant 0 : index
      %c0_11 = arith.constant 0 : index
      %18 = vector.load %arg7[%c0_10, %c0_11] : memref<128x128xf32, #tpu.memory_space<vmem>>, vector<128x128xf32>
      tpu.vector_store %arg7[%c0_10, %c0_11], %17 {strides = array<i32>} : memref<128x128xf32, #tpu.memory_space<vmem>>, vector<128x128xf32>,
    } else {
    }
    %c128_i32 = arith.constant 128 : i32
    %3 = arith.muli %arg1, %c128_i32 : i32
    %4 = tpu.assume_multiple %3, 128 : i32
    %5 = arith.index_cast %4 : i32 to index
    %c0 = arith.constant 0 : index
    %6 = vector.load %arg3[%5, %c0] : memref<128x128xbf16, #tpu.memory_space<vmem>>, vector<128x128xbf16>
    %c0_1 = arith.constant 0 : index
    %c0_2 = arith.constant 0 : index
    %7 = vector.load %arg2[%c0_1, %c0_2] : memref<128x128xi8, #tpu.memory_space<vmem>>, vector<128x128xi8>
    %8 = arith.sitofp %7 : vector<128x128xi8> to vector<128x128xf32>
    %9 = arith.truncf %8 : vector<128x128xf32> to vector<128x128xbf16>
    %c0_3 = arith.constant 0 : index
    %c0_4 = arith.constant 0 : index
    %10 = vector.load %arg7[%c0_3, %c0_4] : memref<128x128xf32, #tpu.memory_space<vmem>>, vector<128x128xf32>
    %cst = arith.constant dense<0.000000e+00> : vector<128x128xf32>
    %11 = tpu.matmul %9, %6, %cst {dimension_numbers = #tpu.dot_dimension_numbers<[1], [0], [0], [1], [0, 0, 1, 1], [], []>} : vector<128x128xbf16>, vector<128x128xbf16>, vector<128x128xf32> -> vector<128x128xf32>
    %12 = arith.addf %10, %11 : vector<128x128xf32>
    %c0_5 = arith.constant 0 : index
    %c0_6 = arith.constant 0 : index
    %13 = vector.load %arg7[%c0_5, %c0_6] : memref<128x128xf32, #tpu.memory_space<vmem>>, vector<128x128xf32>
    tpu.vector_store %arg7[%c0_5, %c0_6], %12 {strides = array<i32>} : memref<128x128xf32, #tpu.memory_space<vmem>>, vector<128x128xf32>,
    %c0_i32_7 = arith.constant 0 : i32
    %14 = arith.cmpi eq, %arg1, %c0_i32_7 : i32
    %15 = arith.extui %14 : i1 to i32
    %c0_i32_8 = arith.constant 0 : i32
    %16 = arith.cmpi ne, %15, %c0_i32_8 : i32
    scf.if %16 {
      %c0_9 = arith.constant 0 : index
      %c0_10 = arith.constant 0 : index
      %17 = vector.load %arg4[%c0_9, %c0_10] : memref<128x1xf32, #tpu.memory_space<vmem>>, vector<128x1xf32>
      %c0_11 = arith.constant 0 : index
      %c0_12 = arith.constant 0 : index
      %18 = vector.load %arg7[%c0_11, %c0_12] : memref<128x128xf32, #tpu.memory_space<vmem>>, vector<128x128xf32>
      %19 = vector.broadcast %17 : vector<128x1xf32> to vector<128x128xf32>
      %20 = arith.mulf %19, %18 : vector<128x128xf32>
      %c0_13 = arith.constant 0 : index
      %c0_14 = arith.constant 0 : index
      %21 = vector.load %arg5[%c0_13, %c0_14] : memref<1x128xf32, #tpu.memory_space<vmem>>, vector<1x128xf32>
      %22 = vector.broadcast %21 : vector<1x128xf32> to vector<128x128xf32>
      %23 = arith.addf %20, %22 : vector<128x128xf32>
      %cst_15 = arith.constant 0.000000e+00 : f32
      %24 = vector.broadcast %cst_15 : f32 to vector<128x128xf32>
      %25 = arith.maximumf %23, %24 : vector<128x128xf32>
      %26 = arith.truncf %25 : vector<128x128xf32> to vector<128x128xbf16>
      %c0_16 = arith.constant 0 : index
      %c0_17 = arith.constant 0 : index
      %27 = vector.load %arg6[%c0_16, %c0_17] : memref<128x128xbf16, #tpu.memory_space<vmem>>, vector<128x128xbf16>
      tpu.vector_store %arg6[%c0_16, %c0_17], %26 {strides = array<i32>} : memref<128x128xbf16, #tpu.memory_space<vmem>>, vector<128x128xbf16>,
    } else {
    }
    return
  }
  func.func @transform_0(%arg0: i32, %arg1: i32) -> (i32, i32) {
    %c0_i32 = arith.constant 0 : i32
    return %arg0, %arg1 : i32, i32
  }
  func.func @transform_1(%arg0: i32, %arg1: i32) -> (i32, i32) {
    %c0_i32 = arith.constant 0 : i32
    %c0_i32_0 = arith.constant 0 : i32
    %c0_i32_1 = arith.constant 0 : i32
    return %c0_i32, %c0_i32_0 : i32, i32
  }
  func.func @transform_2(%arg0: i32, %arg1: i32) -> (i32, i32) {
    %c0_i32 = arith.constant 0 : i32
    %c0_i32_0 = arith.constant 0 : i32
    return %arg0, %c0_i32 : i32, i32
  }
  func.func @transform_3(%arg0: i32, %arg1: i32) -> (i32, i32) {
    %c0_i32 = arith.constant 0 : i32
    %c0_i32_0 = arith.constant 0 : i32
    %c0_i32_1 = arith.constant 0 : i32
    return %c0_i32, %c0_i32_0 : i32, i32
  }
  func.func @transform_4(%arg0: i32, %arg1: i32) -> (i32, i32) {
    %c0_i32 = arith.constant 0 : i32
    %c0_i32_0 = arith.constant 0 : i32
    return %arg0, %c0_i32 : i32, i32
  }
}

module attributes {stable_mosaic.version = 11 : i64} {
  func.func @kernel(%arg0: i32, %arg1: i32, %arg2: memref<128x128xi8, #tpu.memory_space<vmem>>, %arg3: memref<128x128xbf16, #tpu.memory_space<vmem>>, %arg4: memref<128x1xf32, #tpu.memory_space<vmem>>, %arg5: memref<1x128xf32, #tpu.memory_space<vmem>>, %arg6: memref<128x128xf32, #tpu.memory_space<vmem>>, %arg7: memref<128x128xf32, #tpu.memory_space<vmem>>) attributes {dimension_semantics = [#tpu.dimension_semantics<parallel>, #tpu.dimension_semantics<arbitrary>], iteration_bounds = array<i64: 1, 1>, scalar_prefetch = 0 : i64, scratch_operands = 1 : i64, tpu.core_type = #tpu.core_type<tc>, window_params = [{transform_indices = @transform_0, window_bounds = array<i64: 128, 128>}, {pipeline_mode = #tpu.pipeline_mode<synchronous>, transform_indices = @transform_1, window_bounds = array<i64: 128, 128>}, {transform_indices = @transform_2, window_bounds = array<i64: 128, 1>}, {pipeline_mode = #tpu.pipeline_mode<synchronous>, transform_indices = @transform_3, window_bounds = array<i64: 1, 128>}, {transform_indices = @transform_4, window_bounds = array<i64: 128, 128>}]} {
    %c0_i32 = arith.constant 0 : i32
    %0 = arith.cmpi eq, %arg1, %c0_i32 : i32
    %1 = arith.extui %0 : i1 to i32
    %c0_i32_0 = arith.constant 0 : i32
    %2 = arith.cmpi ne, %1, %c0_i32_0 : i32
    scf.if %2 {
      %cst_9 = arith.constant 0.000000e+00 : f32
      %17 = vector.broadcast %cst_9 : f32 to vector<128x128xf32>
      %c0_10 = arith.constant 0 : index
      %c0_11 = arith.constant 0 : index
      %18 = vector.load %arg7[%c0_10, %c0_11] : memref<128x128xf32, #tpu.memory_space<vmem>>, vector<128x128xf32>
      tpu.vector_store %arg7[%c0_10, %c0_11], %17 {strides = array<i32>} : memref<128x128xf32, #tpu.memory_space<vmem>>, vector<128x128xf32>,
    } else {
    }
    %c128_i32 = arith.constant 128 : i32
    %3 = arith.muli %arg1, %c128_i32 : i32
    %4 = tpu.assume_multiple %3, 128 : i32
    %5 = arith.index_cast %4 : i32 to index
    %c0 = arith.constant 0 : index
    %6 = vector.load %arg3[%5, %c0] : memref<128x128xbf16, #tpu.memory_space<vmem>>, vector<128x128xbf16>
    %c0_1 = arith.constant 0 : index
    %c0_2 = arith.constant 0 : index
    %7 = vector.load %arg2[%c0_1, %c0_2] : memref<128x128xi8, #tpu.memory_space<vmem>>, vector<128x128xi8>
    %8 = arith.sitofp %7 : vector<128x128xi8> to vector<128x128xf32>
    %9 = arith.truncf %8 : vector<128x128xf32> to vector<128x128xbf16>
    %c0_3 = arith.constant 0 : index
    %c0_4 = arith.constant 0 : index
    %10 = vector.load %arg7[%c0_3, %c0_4] : memref<128x128xf32, #tpu.memory_space<vmem>>, vector<128x128xf32>
    %cst = arith.constant dense<0.000000e+00> : vector<128x128xf32>
    %11 = tpu.matmul %9, %6, %cst {dimension_numbers = #tpu.dot_dimension_numbers<[1], [0], [0], [1], [0, 0, 1, 1], [], []>} : vector<128x128xbf16>, vector<128x128xbf16>, vector<128x128xf32> -> vector<128x128xf32>
    %12 = arith.addf %10, %11 : vector<128x128xf32>
    %c0_5 = arith.constant 0 : index
    %c0_6 = arith.constant 0 : index
    %13 = vector.load %arg7[%c0_5, %c0_6] : memref<128x128xf32, #tpu.memory_space<vmem>>, vector<128x128xf32>
    tpu.vector_store %arg7[%c0_5, %c0_6], %12 {strides = array<i32>} : memref<128x128xf32, #tpu.memory_space<vmem>>, vector<128x128xf32>,
    %c0_i32_7 = arith.constant 0 : i32
    %14 = arith.cmpi eq, %arg1, %c0_i32_7 : i32
    %15 = arith.extui %14 : i1 to i32
    %c0_i32_8 = arith.constant 0 : i32
    %16 = arith.cmpi ne, %15, %c0_i32_8 : i32
    scf.if %16 {
      %c0_9 = arith.constant 0 : index
      %c0_10 = arith.constant 0 : index
      %17 = vector.load %arg4[%c0_9, %c0_10] : memref<128x1xf32, #tpu.memory_space<vmem>>, vector<128x1xf32>
      %c0_11 = arith.constant 0 : index
      %c0_12 = arith.constant 0 : index
      %18 = vector.load %arg7[%c0_11, %c0_12] : memref<128x128xf32, #tpu.memory_space<vmem>>, vector<128x128xf32>
      %19 = vector.broadcast %17 : vector<128x1xf32> to vector<128x128xf32>
      %20 = arith.mulf %19, %18 : vector<128x128xf32>
      %c0_13 = arith.constant 0 : index
      %c0_14 = arith.constant 0 : index
      %21 = vector.load %arg5[%c0_13, %c0_14] : memref<1x128xf32, #tpu.memory_space<vmem>>, vector<1x128xf32>
      %22 = vector.broadcast %21 : vector<1x128xf32> to vector<128x128xf32>
      %23 = arith.addf %20, %22 : vector<128x128xf32>
      %c0_15 = arith.constant 0 : index
      %c0_16 = arith.constant 0 : index
      %24 = vector.load %arg6[%c0_15, %c0_16] : memref<128x128xf32, #tpu.memory_space<vmem>>, vector<128x128xf32>
      tpu.vector_store %arg6[%c0_15, %c0_16], %23 {strides = array<i32>} : memref<128x128xf32, #tpu.memory_space<vmem>>, vector<128x128xf32>,
    } else {
    }
    return
  }
  func.func @transform_0(%arg0: i32, %arg1: i32) -> (i32, i32) {
    %c0_i32 = arith.constant 0 : i32
    return %arg0, %arg1 : i32, i32
  }
  func.func @transform_1(%arg0: i32, %arg1: i32) -> (i32, i32) {
    %c0_i32 = arith.constant 0 : i32
    %c0_i32_0 = arith.constant 0 : i32
    %c0_i32_1 = arith.constant 0 : i32
    return %c0_i32, %c0_i32_0 : i32, i32
  }
  func.func @transform_2(%arg0: i32, %arg1: i32) -> (i32, i32) {
    %c0_i32 = arith.constant 0 : i32
    %c0_i32_0 = arith.constant 0 : i32
    return %arg0, %c0_i32 : i32, i32
  }
  func.func @transform_3(%arg0: i32, %arg1: i32) -> (i32, i32) {
    %c0_i32 = arith.constant 0 : i32
    %c0_i32_0 = arith.constant 0 : i32
    %c0_i32_1 = arith.constant 0 : i32
    return %c0_i32, %c0_i32_0 : i32, i32
  }
  func.func @transform_4(%arg0: i32, %arg1: i32) -> (i32, i32) {
    %c0_i32 = arith.constant 0 : i32
    %c0_i32_0 = arith.constant 0 : i32
    return %arg0, %c0_i32 : i32, i32
  }
}

</mosaic_0001>

<bundles_post_ra>
// kernel: gcn_forward.4
= control target key start
LH: loop header
LB: loop body
LE: loop exit
PB: predicated region body
PF: predicated region fallthrough
CT: control target
= control target key end

     0   :  { %v494_v0 = vmov 0   ;;  %s635_s2 = inlined_call_operand.vmem [shape: f32[128,1], index: 2, kind: input, shape index: {}]   ;;  %s636_s1 = inlined_call_operand.vmem [shape: bf16[128,128], index: 1, kind: input, shape index: {}]   ;;  %s637_s0 = inlined_call_operand.vmem [shape: bf16[128,128], index: 0, kind: input, shape index: {}]   ;;  %s638_s3 = inlined_call_operand.vmem [shape: bf16[128,128], index: 3, kind: output, shape index: {}]  }
   0x1   :  { %491 = vset.pattern.permute.xlu0 %v494_v0  ;;  %v191_v1 = vld [vmem:[%s635_s2] sm:$0xff]  ;;  %v418_v2 = vld [vmem:[%s636_s1 + $0x38] sm:$0xff]  ;;  %492 = vset.pattern.permute.xlu1 %v494_v0  ;;  %v193_v3 = vld [vmem:[%s635_s2 + $0x10] sm:$0xff] }
   0x2   :  { %209 = vperm.xlu0 %491, %v191_v1   ;;  %493 = vset.pattern.permute.xlu2 %v494_v0  ;;  %v417_v4 = vld [vmem:[%s636_s1 + $0x30] sm:$0xff]  ;;  %v192_v5 = vld [vmem:[%s635_s2 + $0x8] sm:$0xff]  ;;  %v195_v7 = vld [vmem:[%s635_s2 + $0x20] sm:$0xff] }
   0x3   :  { %142 = vmatpush.bf16.msra.mxu0 %v418_v2  ;;  %466 = vmatpush.bf16.msra.mxu1 %v418_v2  ;;  %v416_v6 = vld [vmem:[%s636_s1 + $0x28] sm:$0xff]  ;;  %v194_v8 = vld [vmem:[%s635_s2 + $0x18] sm:$0xff]  ;;  %v415_v9 = vld [vmem:[%s636_s1 + $0x20] sm:$0xff] }
   0x4   :  { %467 = vmatpush.bf16.msra.mxu2 %v418_v2  ;;  %468 = vmatpush.bf16.msra.mxu3 %v418_v2  ;;  %v196_v10 = vld [vmem:[%s635_s2 + $0x28] sm:$0xff]  ;;  %v197_v11 = vld [vmem:[%s635_s2 + $0x30] sm:$0xff]  ;;  %v414_v12 = vld [vmem:[%s636_s1 + $0x18] sm:$0xff] }
   0x5   :  { %219 = vperm.xlu1 %492, %v193_v3   ;;  %229 = vperm.xlu2 %493, %v195_v7   ;;  %v198_v13 = vld [vmem:[%s635_s2 + $0x38] sm:$0xff]  ;;  %v413_v14 = vld [vmem:[%s636_s1 + $0x10] sm:$0xff]  ;;  %v199_v15 = vld [vmem:[%s635_s2 + $0x40] sm:$0xff] }
   0x6   :  { %v200_v16 = vld [vmem:[%s635_s2 + $0x48] sm:$0xff]  ;;  %v201_v18 = vld [vmem:[%s635_s2 + $0x50] sm:$0xff]  ;;  %v411_v19 = vld [vmem:[%s636_s1] sm:$0xff] }
   0x7   :  { %143 = vmatpush.bf16.msra.mxu0 %v417_v4  ;;  %469 = vmatpush.bf16.msra.mxu1 %v417_v4  ;;  %v412_v17 = vld [vmem:[%s636_s1 + $0x8] sm:$0xff]  ;;  %v403_v20 = vld [vmem:[%s637_s0] sm:$0xff]  ;;  %v202_v21 = vld [vmem:[%s635_s2 + $0x58] sm:$0xff] }
   0x8   :  { %470 = vmatpush.bf16.msra.mxu2 %v417_v4  ;;  %471 = vmatpush.bf16.msra.mxu3 %v417_v4  ;;  %v203_v22 = vld [vmem:[%s635_s2 + $0x60] sm:$0xff]  ;;  %v405_v23 = vld [vmem:[%s637_s0 + $0x10] sm:$0xff]  ;;  %v204_v26 = vld [vmem:[%s635_s2 + $0x68] sm:$0xff] }
   0x9   :  { %v407_v24 = vld [vmem:[%s637_s0 + $0x20] sm:$0xff]  ;;  %v409_v25 = vld [vmem:[%s637_s0 + $0x30] sm:$0xff]  ;;  %v206_v28 = vld [vmem:[%s635_s2 + $0x78] sm:$0xff] }
   0xa   :  { %214 = vperm.xlu0 %491, %v192_v5   ;;  %v205_v27 = vld [vmem:[%s635_s2 + $0x70] sm:$0xff]  ;;  %v404_v29 = vld [vmem:[%s637_s0 + $0x8] sm:$0xff]  ;;  %v406_v30 = vld [vmem:[%s637_s0 + $0x18] sm:$0xff] }
   0xb   :  { %144 = vmatpush.bf16.msra.mxu0 %v416_v6  ;;  %472 = vmatpush.bf16.msra.mxu1 %v416_v6  ;;  %v408_v31 = vld [vmem:[%s637_s0 + $0x28] sm:$0xff]  ;;  %v410_v32 = vld [vmem:[%s637_s0 + $0x38] sm:$0xff] }
   0xc   :  { %473 = vmatpush.bf16.msra.mxu2 %v416_v6  ;;  %474 = vmatpush.bf16.msra.mxu3 %v416_v6 }
   0xd   :  { %224 = vperm.xlu1 %492, %v194_v8   ;;  %234 = vperm.xlu2 %493, %v196_v10  }
   0xf   :  { %145 = vmatpush.bf16.msra.mxu0 %v415_v9  ;;  %475 = vmatpush.bf16.msra.mxu1 %v415_v9 }
  0x10   :  { %476 = vmatpush.bf16.msra.mxu2 %v415_v9  ;;  %477 = vmatpush.bf16.msra.mxu3 %v415_v9 }
  0x12   :  { %239 = vperm.xlu0 %491, %v197_v11  }
  0x13   :  { %146 = vmatpush.bf16.msra.mxu0 %v414_v12  ;;  %478 = vmatpush.bf16.msra.mxu1 %v414_v12 }
  0x14   :  { %479 = vmatpush.bf16.msra.mxu2 %v414_v12  ;;  %480 = vmatpush.bf16.msra.mxu3 %v414_v12 }
  0x15   :  { %244 = vperm.xlu1 %492, %v198_v13   ;;  %249 = vperm.xlu2 %493, %v199_v15  }
  0x17   :  { %147 = vmatpush.bf16.msra.mxu0 %v413_v14  ;;  %481 = vmatpush.bf16.msra.mxu1 %v413_v14 }
  0x18   :  { %482 = vmatpush.bf16.msra.mxu2 %v413_v14  ;;  %483 = vmatpush.bf16.msra.mxu3 %v413_v14 }
  0x1a   :  { %254 = vperm.xlu0 %491, %v200_v16  }
  0x1b   :  { %148 = vmatpush.bf16.msra.mxu0 %v412_v17  ;;  %484 = vmatpush.bf16.msra.mxu1 %v412_v17 }
  0x1c   :  { %485 = vmatpush.bf16.msra.mxu2 %v412_v17  ;;  %486 = vmatpush.bf16.msra.mxu3 %v412_v17 }
  0x1d   :  { %259 = vperm.xlu1 %492, %v201_v18   ;;  %264 = vperm.xlu2 %493, %v202_v21  }
  0x1f   :  { %149 = vmatpush.bf16.msra.mxu0 %v411_v19  ;;  %487 = vmatpush.bf16.msra.mxu1 %v411_v19 }
  0x20   :  { %488 = vmatpush.bf16.msra.mxu2 %v411_v19  ;;  %489 = vmatpush.bf16.msra.mxu3 %v411_v19 }
  0x22   :  { %269 = vperm.xlu0 %491, %v203_v22   ;;  %150 = vmatmul.bf16.vlgmr.msra.gmra.mxu0 %v403_v20 }
  0x23   :  { %160 = vmatmul.bf16.vlgmr.msra.gmra.mxu1 %v405_v23  ;;  %170 = vmatmul.bf16.vlgmr.msra.gmra.mxu2 %v407_v24 }
  0x24   :  { %180 = vmatmul.bf16.vlgmr.msra.gmra.mxu3 %v409_v25 }
  0x25   :  { %274 = vperm.xlu1 %492, %v204_v26   ;;  %279 = vperm.xlu2 %493, %v205_v27  }
  0x2a   :  { %284 = vperm.xlu0 %491, %v206_v28  }
  0x32   :  { %155 = vmatmul.bf16.gmra.mxu0 %v404_v29 }
  0x33   :  { %165 = vmatmul.bf16.gmra.mxu1 %v406_v30  ;;  %175 = vmatmul.bf16.gmra.mxu2 %v408_v31 }
  0x34   :  { %185 = vmatmul.bf16.gmra.mxu3 %v410_v32 }
  0x5f   :  { %v230_v37 = vpop.permute.xlu2 %229 }
  0x67   :  { %v235_v41 = vpop.permute.xlu2 %234 }
  0x6f   :  { %v250_v53 = vpop.permute.xlu2 %249 }
  0x74   :  { %v210_v33 = vpop.permute.xlu0 %209 }
  0x77   :  { %v220_v34 = vpop.permute.xlu1 %219  ;;  %v265_v4 = vpop.permute.xlu2 %264 }
  0x7c   :  { %v215_v35 = vpop.permute.xlu0 %214 }
  0x7f   :  { %v225_v36 = vpop.permute.xlu1 %224  ;;  %v280_v15 = vpop.permute.xlu2 %279 }
  0x84   :  { %v240_v38 = vpop.permute.xlu0 %239 }
  0x87   :  { %v245_v39 = vpop.permute.xlu1 %244 }
  0x8c   :  { %v255_v43 = vpop.permute.xlu0 %254 }
  0x8f   :  { %v260_v44 = vpop.permute.xlu1 %259 }
  0x94   :  { %v270_v56 = vpop.permute.xlu0 %269 }
  0x97   :  { %v275_v57 = vpop.permute.xlu1 %274 }
  0x9c   :  { %v285_v17 = vpop.permute.xlu0 %284 }
  0x9f   :  { %v151_v40 = vpop.f32.mrf.mxu0 }
  0xa0   :  { %v161_v42 = vpop.f32.mrf.mxu1  ;;  %v287_v48 = vmul.f32 %v210_v33, %v151_v40 }
  0xa1   :  { %v291_v51 = vmul.f32 %v230_v37, %v161_v42 }
  0xa6   :  { %v171_v45 = vpop.f32.mrf.mxu2 }
  0xa7   :  { %v181_v46 = vpop.f32.mrf.mxu3  ;;  %v153_v47 = vpop.f32.mrf.mxu0  ;;  %v295_v59 = vmul.f32 %v250_v53, %v171_v45 }
  0xa8   :  { %v288_v49 = vmul.f32 %v215_v35, %v153_v47  ;;  %v163_v50 = vpop.f32.mrf.mxu1  ;;  %v299_v63 = vmul.f32 %v270_v56, %v181_v46 }
  0xa9   :  { %v292_v52 = vmul.f32 %v235_v41, %v163_v50 }
  0xaa   :  { %v422_v54 = vpack.c.bf16 %v288_v49, %v287_v48 }
  0xab   :  { %v432_v55 = vpack.c.bf16 %v292_v52, %v291_v51 }
  0xac   :  { %423 = vst [vmem:[%s638_s3] sm:$0xff] %v422_v54  }
  0xad   :  { %460 = vst [vmem:[%s638_s3 + $0x10] sm:$0xff] %v432_v55  }
  0xae   :  { %v173_v58 = vpop.f32.mrf.mxu2 }
  0xaf   :  { %v296_v60 = vmul.f32 %v255_v43, %v173_v58  ;;  %v183_v61 = vpop.f32.mrf.mxu3  ;;  %v156_v62 = vpop.f32.mrf.mxu0 }
  0xb0   :  { %v300_v0 = vmul.f32 %v275_v57, %v183_v61  ;;  %v166_v1 = vpop.f32.mrf.mxu1  ;;  %v289_v8 = vmul.f32 %v220_v34, %v156_v62 }
  0xb1   :  { %v442_v2 = vpack.c.bf16 %v296_v60, %v295_v59  ;;  %v293_v11 = vmul.f32 %v240_v38, %v166_v1 }
  0xb2   :  { %v452_v3 = vpack.c.bf16 %v300_v0, %v299_v63 }
  0xb3   :  { %462 = vst [vmem:[%s638_s3 + $0x20] sm:$0xff] %v442_v2  }
  0xb4   :  { %464 = vst [vmem:[%s638_s3 + $0x30] sm:$0xff] %v452_v3  }
  0xb6   :  { %v176_v5 = vpop.f32.mrf.mxu2 }
  0xb7   :  { %v186_v6 = vpop.f32.mrf.mxu3  ;;  %v158_v7 = vpop.f32.mrf.mxu0  ;;  %v297_v18 = vmul.f32 %v260_v44, %v176_v5 }
  0xb8   :  { %v290_v9 = vmul.f32 %v225_v36, %v158_v7  ;;  %v168_v10 = vpop.f32.mrf.mxu1  ;;  %v301_v21 = vmul.f32 %v280_v15, %v186_v6 }
  0xb9   :  { %v294_v12 = vmul.f32 %v245_v39, %v168_v10 }
  0xba   :  { %v427_v13 = vpack.c.bf16 %v290_v9, %v289_v8 }
  0xbb   :  { %v437_v14 = vpack.c.bf16 %v294_v12, %v293_v11 }
  0xbc   :  { %459 = vst [vmem:[%s638_s3 + $0x8] sm:$0xff] %v427_v13  }
  0xbd   :  { %461 = vst [vmem:[%s638_s3 + $0x18] sm:$0xff] %v437_v14  }
  0xbe   :  { %v178_v16 = vpop.f32.mrf.mxu2 }
  0xbf   :  { %v298_v19 = vmul.f32 %v265_v4, %v178_v16  ;;  %v188_v20 = vpop.f32.mrf.mxu3 }
  0xc0   :  { %v302_v22 = vmul.f32 %v285_v17, %v188_v20 }
  0xc1   :  { %v447_v23 = vpack.c.bf16 %v298_v19, %v297_v18 }
  0xc2   :  { %v457_v24 = vpack.c.bf16 %v302_v22, %v301_v21 }
  0xc3   :  { %463 = vst [vmem:[%s638_s3 + $0x28] sm:$0xff] %v447_v23  }
  0xc4   :  { %465 = vst [vmem:[%s638_s3 + $0x38] sm:$0xff] %v457_v24  }

// kernel: gcn_forward.5
= control target key start
LH: loop header
LB: loop body
LE: loop exit
PB: predicated region body
PF: predicated region fallthrough
CT: control target
= control target key end

     0   :  { %v568_v0 = vmov 0   ;;  %s747_s2 = inlined_call_operand.vmem [shape: f32[128,1], index: 2, kind: input, shape index: {}]   ;;  %s748_s1 = inlined_call_operand.vmem [shape: bf16[128,128], index: 1, kind: input, shape index: {}]   ;;  %s749_s0 = inlined_call_operand.vmem [shape: s8[128,128], index: 0, kind: input, shape index: {}]   ;;  %s750_s3 = inlined_call_operand.vmem [shape: f32[1,128], index: 3, kind: input, shape index: {}]   ;;  %s751_s4 = inlined_call_operand.vmem [shape: bf16[128,128], index: 4, kind: output, shape index: {}]  }
   0x1   :  { %564 = vset.pattern.permute.xlu0 %v568_v0  ;;  %v250_v1 = vld [vmem:[%s747_s2] sm:$0xff]  ;;  %v491_v2 = vld [vmem:[%s748_s1 + $0x38] sm:$0xff]  ;;  %565 = vset.pattern.permute.xlu1 %v568_v0  ;;  %v252_v3 = vld [vmem:[%s747_s2 + $0x10] sm:$0xff] }
   0x2   :  { %284 = vperm.xlu0 %564, %v250_v1   ;;  %566 = vset.pattern.permute.xlu2 %v568_v0  ;;  %v490_v4 = vld [vmem:[%s748_s1 + $0x30] sm:$0xff]  ;;  %v251_v5 = vld [vmem:[%s747_s2 + $0x8] sm:$0xff]  ;;  %v254_v7 = vld [vmem:[%s747_s2 + $0x20] sm:$0xff] }
   0x3   :  { %166 = vmatpush.bf16.msra.mxu0 %v491_v2  ;;  %539 = vmatpush.bf16.msra.mxu1 %v491_v2  ;;  %v489_v6 = vld [vmem:[%s748_s1 + $0x28] sm:$0xff]  ;;  %v253_v8 = vld [vmem:[%s747_s2 + $0x18] sm:$0xff]  ;;  %v488_v9 = vld [vmem:[%s748_s1 + $0x20] sm:$0xff] }
   0x4   :  { %540 = vmatpush.bf16.msra.mxu2 %v491_v2  ;;  %541 = vmatpush.bf16.msra.mxu3 %v491_v2  ;;  %v255_v10 = vld [vmem:[%s747_s2 + $0x28] sm:$0xff]  ;;  %v256_v11 = vld [vmem:[%s747_s2 + $0x30] sm:$0xff]  ;;  %v487_v12 = vld [vmem:[%s748_s1 + $0x18] sm:$0xff] }
   0x5   :  { %294 = vperm.xlu1 %565, %v252_v3   ;;  %304 = vperm.xlu2 %566, %v254_v7   ;;  %v257_v13 = vld [vmem:[%s747_s2 + $0x38] sm:$0xff]  ;;  %v486_v14 = vld [vmem:[%s748_s1 + $0x10] sm:$0xff]  ;;  %v639_v15 = vld [vmem:[%s749_s0] sm:$0xff] }
   0x6   :  { %v644_v16 = vld [vmem:[%s749_s0 + $0x8] sm:$0xff]  ;;  %v649_v17 = vld [vmem:[%s749_s0 + $0x10] sm:$0xff]  ;;  %v654_v18 = vld [vmem:[%s749_s0 + $0x18] sm:$0xff]  ;;  %v62_v19 = vunpack.c.0.s8 %v639_v15  ;;  %v63_v20 = vunpack.c.1.s8 %v639_v15  ;;  %v64_v47 = vunpack.c.2.s8 %v639_v15  ;;  %v65_v48 = vunpack.c.3.s8 %v639_v15 }
   0x7   :  { %167 = vmatpush.bf16.msra.mxu0 %v490_v4  ;;  %542 = vmatpush.bf16.msra.mxu1 %v490_v4  ;;  %v258_v21 = vld [vmem:[%s747_s2 + $0x40] sm:$0xff]  ;;  %v259_v22 = vld [vmem:[%s747_s2 + $0x48] sm:$0xff]  ;;  %v66_v24 = vunpack.c.0.s8 %v644_v16  ;;  %v67_v25 = vunpack.c.1.s8 %v644_v16  ;;  %v70_v26 = vunpack.c.0.s8 %v649_v17  ;;  %v71_v27 = vunpack.c.1.s8 %v649_v17  ;;  %v260_v32 = vld [vmem:[%s747_s2 + $0x50] sm:$0xff] }
   0x8   :  { %543 = vmatpush.bf16.msra.mxu2 %v490_v4  ;;  %544 = vmatpush.bf16.msra.mxu3 %v490_v4  ;;  %v485_v23 = vld [vmem:[%s748_s1 + $0x8] sm:$0xff]  ;;  %v74_v28 = vunpack.c.0.s8 %v654_v18  ;;  %v75_v29 = vunpack.c.1.s8 %v654_v18  ;;  %v78_v30 = vcvt.s32.f32 %v62_v19  ;;  %v79_v31 = vcvt.s32.f32 %v63_v20  ;;  %v484_v33 = vld [vmem:[%s748_s1] sm:$0xff]  ;;  %v261_v41 = vld [vmem:[%s747_s2 + $0x58] sm:$0xff] }
   0x9   :  { %v82_v34 = vcvt.s32.f32 %v66_v24  ;;  %v83_v35 = vcvt.s32.f32 %v67_v25  ;;  %v86_v36 = vcvt.s32.f32 %v70_v26  ;;  %v87_v37 = vcvt.s32.f32 %v71_v27  ;;  %v262_v42 = vld [vmem:[%s747_s2 + $0x60] sm:$0xff]  ;;  %v263_v46 = vld [vmem:[%s747_s2 + $0x68] sm:$0xff]  ;;  %v264_v49 = vld [vmem:[%s747_s2 + $0x70] sm:$0xff] }
   0xa   :  { %289 = vperm.xlu0 %564, %v251_v5   ;;  %v90_v38 = vcvt.s32.f32 %v74_v28  ;;  %v91_v39 = vcvt.s32.f32 %v75_v29  ;;  %v94_v40 = vpack.c.bf16 %v79_v31, %v78_v30  ;;  %v265_v50 = vld [vmem:[%s747_s2 + $0x78] sm:$0xff]  ;;  %v68_v51 = vunpack.c.2.s8 %v644_v16 }
   0xb   :  { %168 = vmatpush.bf16.msra.mxu0 %v489_v6  ;;  %545 = vmatpush.bf16.msra.mxu1 %v489_v6  ;;  %v96_v43 = vpack.c.bf16 %v83_v35, %v82_v34  ;;  %v98_v44 = vpack.c.bf16 %v87_v37, %v86_v36  ;;  %v69_v52 = vunpack.c.3.s8 %v644_v16  ;;  %v72_v53 = vunpack.c.2.s8 %v649_v17 }
   0xc   :  { %546 = vmatpush.bf16.msra.mxu2 %v489_v6  ;;  %547 = vmatpush.bf16.msra.mxu3 %v489_v6  ;;  %v100_v45 = vpack.c.bf16 %v91_v39, %v90_v38  ;;  %v73_v54 = vunpack.c.3.s8 %v649_v17  ;;  %v76_v55 = vunpack.c.2.s8 %v654_v18  ;;  %v77_v56 = vunpack.c.3.s8 %v654_v18  ;;  %v705_v18 = vld [vmem:[%s750_s3] ss:$0 sm:$0xff] }
   0xd   :  { %299 = vperm.xlu1 %565, %v253_v8   ;;  %309 = vperm.xlu2 %566, %v255_v10   ;;  %v80_v57 = vcvt.s32.f32 %v64_v47  ;;  %v81_v58 = vcvt.s32.f32 %v65_v48  ;;  %v84_v59 = vcvt.s32.f32 %v68_v51  ;;  %v85_v60 = vcvt.s32.f32 %v69_v52 }
   0xe   :  { %v88_v61 = vcvt.s32.f32 %v72_v53  ;;  %v89_v62 = vcvt.s32.f32 %v73_v54  ;;  %v92_v63 = vcvt.s32.f32 %v76_v55  ;;  %v93_v0 = vcvt.s32.f32 %v77_v56 }
   0xf   :  { %169 = vmatpush.bf16.msra.mxu0 %v488_v9  ;;  %548 = vmatpush.bf16.msra.mxu1 %v488_v9  ;;  %v95_v1 = vpack.c.bf16 %v81_v58, %v80_v57  ;;  %v97_v2 = vpack.c.bf16 %v85_v60, %v84_v59 }
  0x10   :  { %549 = vmatpush.bf16.msra.mxu2 %v488_v9  ;;  %550 = vmatpush.bf16.msra.mxu3 %v488_v9  ;;  %v99_v3 = vpack.c.bf16 %v89_v62, %v88_v61  ;;  %v101_v4 = vpack.c.bf16 %v93_v0, %v92_v63 }
  0x12   :  { %314 = vperm.xlu0 %564, %v256_v11  }
  0x13   :  { %170 = vmatpush.bf16.msra.mxu0 %v487_v12  ;;  %551 = vmatpush.bf16.msra.mxu1 %v487_v12 }
  0x14   :  { %552 = vmatpush.bf16.msra.mxu2 %v487_v12  ;;  %553 = vmatpush.bf16.msra.mxu3 %v487_v12 }
  0x15   :  { %319 = vperm.xlu1 %565, %v257_v13   ;;  %324 = vperm.xlu2 %566, %v258_v21  }
  0x17   :  { %171 = vmatpush.bf16.msra.mxu0 %v486_v14  ;;  %554 = vmatpush.bf16.msra.mxu1 %v486_v14 }
  0x18   :  { %555 = vmatpush.bf16.msra.mxu2 %v486_v14  ;;  %556 = vmatpush.bf16.msra.mxu3 %v486_v14 }
  0x1a   :  { %329 = vperm.xlu0 %564, %v259_v22  }
  0x1b   :  { %172 = vmatpush.bf16.msra.mxu0 %v485_v23  ;;  %557 = vmatpush.bf16.msra.mxu1 %v485_v23 }
  0x1c   :  { %558 = vmatpush.bf16.msra.mxu2 %v485_v23  ;;  %559 = vmatpush.bf16.msra.mxu3 %v485_v23 }
  0x1d   :  { %334 = vperm.xlu1 %565, %v260_v32   ;;  %339 = vperm.xlu2 %566, %v261_v41  }
  0x1f   :  { %173 = vmatpush.bf16.msra.mxu0 %v484_v33  ;;  %560 = vmatpush.bf16.msra.mxu1 %v484_v33 }
  0x20   :  { %561 = vmatpush.bf16.msra.mxu2 %v484_v33  ;;  %562 = vmatpush.bf16.msra.mxu3 %v484_v33 }
  0x22   :  { %344 = vperm.xlu0 %564, %v262_v42   ;;  %174 = vmatmul.bf16.vlgmr.msra.gmra.mxu0 %v94_v40 }
  0x23   :  { %184 = vmatmul.bf16.vlgmr.msra.gmra.mxu1 %v96_v43  ;;  %194 = vmatmul.bf16.vlgmr.msra.gmra.mxu2 %v98_v44 }
  0x24   :  { %204 = vmatmul.bf16.vlgmr.msra.gmra.mxu3 %v100_v45 }
  0x25   :  { %349 = vperm.xlu1 %565, %v263_v46   ;;  %354 = vperm.xlu2 %566, %v264_v49  }
  0x2a   :  { %359 = vperm.xlu0 %564, %v265_v50  }
  0x32   :  { %179 = vmatmul.bf16.gmra.mxu0 %v95_v1 }
  0x33   :  { %189 = vmatmul.bf16.gmra.mxu1 %v97_v2  ;;  %199 = vmatmul.bf16.gmra.mxu2 %v99_v3 }
  0x34   :  { %209 = vmatmul.bf16.gmra.mxu3 %v101_v4 }
  0x5f   :  { %v305_v9 = vpop.permute.xlu2 %304 }
  0x67   :  { %v310_v12 = vpop.permute.xlu2 %309 }
  0x6f   :  { %v325_v20 = vpop.permute.xlu2 %324 }
  0x74   :  { %v285_v5 = vpop.permute.xlu0 %284 }
  0x77   :  { %v295_v6 = vpop.permute.xlu1 %294  ;;  %v340_v49 = vpop.permute.xlu2 %339 }
  0x7c   :  { %v290_v7 = vpop.permute.xlu0 %289 }
  0x7f   :  { %v300_v8 = vpop.permute.xlu1 %299 }
  0x84   :  { %v315_v10 = vpop.permute.xlu0 %314 }
  0x87   :  { %v320_v11 = vpop.permute.xlu1 %319 }
  0x8c   :  { %v330_v15 = vpop.permute.xlu0 %329 }
  0x8f   :  { %v335_v16 = vpop.permute.xlu1 %334 }
  0x94   :  { %v345_v30 = vpop.permute.xlu0 %344 }
  0x97   :  { %v350_v38 = vpop.permute.xlu1 %349 }
  0x9f   :  { %v175_v13 = vpop.f32.mrf.mxu0 }
  0xa0   :  { %v185_v14 = vpop.f32.mrf.mxu1  ;;  %v362_v17 = vmul.f32 %v285_v5, %v175_v13  ;;  %v355_v5 = vpop.permute.xlu2 %354 }
  0xa1   :  { %v366_v19 = vmul.f32 %v305_v9, %v185_v14 }
  0xa2   :  { %v382_v24 = vadd.f32 %v705_v18, %v362_v17 }
  0xa3   :  { %v386_v27 = vadd.f32 %v705_v18, %v366_v19  ;;  %v360_v19 = vpop.permute.xlu0 %359 }
  0xa4   :  { %v398_v33 = vmax.f32 %v382_v24, 0.0 }
  0xa5   :  { %v402_v36 = vmax.f32 %v386_v27, 0.0 }
  0xa6   :  { %v195_v21 = vpop.f32.mrf.mxu2 }
  0xa7   :  { %v205_v22 = vpop.f32.mrf.mxu3  ;;  %v177_v23 = vpop.f32.mrf.mxu0  ;;  %v370_v31 = vmul.f32 %v325_v20, %v195_v21 }
  0xa8   :  { %v363_v25 = vmul.f32 %v290_v7, %v177_v23  ;;  %v187_v26 = vpop.f32.mrf.mxu1  ;;  %v374_v34 = vmul.f32 %v345_v30, %v205_v22 }
  0xa9   :  { %v367_v28 = vmul.f32 %v310_v12, %v187_v26  ;;  %v390_v41 = vadd.f32 %v705_v18, %v370_v31 }
  0xaa   :  { %v383_v29 = vadd.f32 %v705_v18, %v363_v25  ;;  %v394_v46 = vadd.f32 %v705_v18, %v374_v34 }
  0xab   :  { %v387_v32 = vadd.f32 %v705_v18, %v367_v28  ;;  %v406_v52 = vmax.f32 %v390_v41, 0.0 }
  0xac   :  { %v399_v35 = vmax.f32 %v383_v29, 0.0  ;;  %v410_v54 = vmax.f32 %v394_v46, 0.0 }
  0xad   :  { %v403_v37 = vmax.f32 %v387_v32, 0.0 }
  0xae   :  { %v495_v39 = vpack.c.bf16 %v399_v35, %v398_v33  ;;  %v197_v40 = vpop.f32.mrf.mxu2 }
  0xaf   :  { %v505_v42 = vpack.c.bf16 %v403_v37, %v402_v36  ;;  %v371_v43 = vmul.f32 %v330_v15, %v197_v40  ;;  %v207_v44 = vpop.f32.mrf.mxu3  ;;  %v180_v45 = vpop.f32.mrf.mxu0 }
  0xb0   :  { %496 = vst [vmem:[%s751_s4] sm:$0xff] %v495_v39   ;;  %v375_v47 = vmul.f32 %v350_v38, %v207_v44  ;;  %v190_v48 = vpop.f32.mrf.mxu1  ;;  %v364_v56 = vmul.f32 %v295_v6, %v180_v45 }
  0xb1   :  { %533 = vst [vmem:[%s751_s4 + $0x10] sm:$0xff] %v505_v42   ;;  %v391_v50 = vadd.f32 %v705_v18, %v371_v43  ;;  %v368_v58 = vmul.f32 %v315_v10, %v190_v48 }
  0xb2   :  { %v395_v51 = vadd.f32 %v705_v18, %v375_v47  ;;  %v384_v63 = vadd.f32 %v705_v18, %v364_v56 }
  0xb3   :  { %v407_v53 = vmax.f32 %v391_v50, 0.0  ;;  %v388_v2 = vadd.f32 %v705_v18, %v368_v58 }
  0xb4   :  { %v411_v55 = vmax.f32 %v395_v51, 0.0  ;;  %v400_v9 = vmax.f32 %v384_v63, 0.0 }
  0xb5   :  { %v515_v57 = vpack.c.bf16 %v407_v53, %v406_v52  ;;  %v404_v13 = vmax.f32 %v388_v2, 0.0 }
  0xb6   :  { %v525_v59 = vpack.c.bf16 %v411_v55, %v410_v54  ;;  %v200_v60 = vpop.f32.mrf.mxu2 }
  0xb7   :  { %535 = vst [vmem:[%s751_s4 + $0x20] sm:$0xff] %v515_v57   ;;  %v210_v61 = vpop.f32.mrf.mxu3  ;;  %v182_v62 = vpop.f32.mrf.mxu0  ;;  %v372_v6 = vmul.f32 %v335_v16, %v200_v60 }
  0xb8   :  { %537 = vst [vmem:[%s751_s4 + $0x30] sm:$0xff] %v525_v59   ;;  %v365_v0 = vmul.f32 %v300_v8, %v182_v62  ;;  %v192_v1 = vpop.f32.mrf.mxu1  ;;  %v376_v10 = vmul.f32 %v355_v5, %v210_v61 }
  0xb9   :  { %v369_v3 = vmul.f32 %v320_v11, %v192_v1  ;;  %v392_v8 = vadd.f32 %v705_v18, %v372_v6 }
  0xba   :  { %v385_v4 = vadd.f32 %v705_v18, %v365_v0  ;;  %v396_v11 = vadd.f32 %v705_v18, %v376_v10 }
  0xbb   :  { %v389_v7 = vadd.f32 %v705_v18, %v369_v3  ;;  %v408_v25 = vmax.f32 %v392_v8, 0.0 }
  0xbc   :  { %v401_v12 = vmax.f32 %v385_v4, 0.0  ;;  %v412_v27 = vmax.f32 %v396_v11, 0.0 }
  0xbd   :  { %v405_v14 = vmax.f32 %v389_v7, 0.0 }
  0xbe   :  { %v500_v15 = vpack.c.bf16 %v401_v12, %v400_v9  ;;  %v202_v17 = vpop.f32.mrf.mxu2 }
  0xbf   :  { %v510_v20 = vpack.c.bf16 %v405_v14, %v404_v13  ;;  %v373_v21 = vmul.f32 %v340_v49, %v202_v17  ;;  %v212_v22 = vpop.f32.mrf.mxu3 }
  0xc0   :  { %532 = vst [vmem:[%s751_s4 + $0x8] sm:$0xff] %v500_v15   ;;  %v377_v16 = vmul.f32 %v360_v19, %v212_v22 }
  0xc1   :  { %534 = vst [vmem:[%s751_s4 + $0x18] sm:$0xff] %v510_v20   ;;  %v393_v23 = vadd.f32 %v705_v18, %v373_v21 }
  0xc2   :  { %v397_v24 = vadd.f32 %v705_v18, %v377_v16 }
  0xc3   :  { %v409_v26 = vmax.f32 %v393_v23, 0.0 }
  0xc4   :  { %v413_v28 = vmax.f32 %v397_v24, 0.0 }
  0xc5   :  { %v520_v29 = vpack.c.bf16 %v409_v26, %v408_v25 }
  0xc6   :  { %v530_v30 = vpack.c.bf16 %v413_v28, %v412_v27 }
  0xc7   :  { %536 = vst [vmem:[%s751_s4 + $0x28] sm:$0xff] %v520_v29  }
  0xc8   :  { %538 = vst [vmem:[%s751_s4 + $0x38] sm:$0xff] %v530_v30  }

// kernel: gcn_forward.7
= control target key start
LH: loop header
LB: loop body
LE: loop exit
PB: predicated region body
PF: predicated region fallthrough
CT: control target
= control target key end

     0   :  { %v489_v0 = vmov 0   ;;  %s692_s2 = inlined_call_operand.vmem [shape: f32[128,1], index: 2, kind: input, shape index: {}]   ;;  %s693_s1 = inlined_call_operand.vmem [shape: bf16[128,128], index: 1, kind: input, shape index: {}]   ;;  %s694_s0 = inlined_call_operand.vmem [shape: s8[128,128], index: 0, kind: input, shape index: {}]   ;;  %s695_s3 = inlined_call_operand.vmem [shape: f32[1,128], index: 3, kind: input, shape index: {}]   ;;  %s696_s4 = inlined_call_operand.vmem [shape: f32[128,128], index: 4, kind: output, shape index: {}]  }
   0x1   :  { %485 = vset.pattern.permute.xlu0 %v489_v0  ;;  %v250_v1 = vld [vmem:[%s692_s2] sm:$0xff]  ;;  %v459_v2 = vld [vmem:[%s693_s1 + $0x38] sm:$0xff]  ;;  %486 = vset.pattern.permute.xlu1 %v489_v0  ;;  %v252_v3 = vld [vmem:[%s692_s2 + $0x10] sm:$0xff] }
   0x2   :  { %284 = vperm.xlu0 %485, %v250_v1   ;;  %487 = vset.pattern.permute.xlu2 %v489_v0  ;;  %v458_v4 = vld [vmem:[%s693_s1 + $0x30] sm:$0xff]  ;;  %v251_v5 = vld [vmem:[%s692_s2 + $0x8] sm:$0xff]  ;;  %v254_v7 = vld [vmem:[%s692_s2 + $0x20] sm:$0xff] }
   0x3   :  { %166 = vmatpush.bf16.msra.mxu0 %v459_v2  ;;  %460 = vmatpush.bf16.msra.mxu1 %v459_v2  ;;  %v457_v6 = vld [vmem:[%s693_s1 + $0x28] sm:$0xff]  ;;  %v253_v8 = vld [vmem:[%s692_s2 + $0x18] sm:$0xff]  ;;  %v456_v9 = vld [vmem:[%s693_s1 + $0x20] sm:$0xff] }
   0x4   :  { %461 = vmatpush.bf16.msra.mxu2 %v459_v2  ;;  %462 = vmatpush.bf16.msra.mxu3 %v459_v2  ;;  %v255_v10 = vld [vmem:[%s692_s2 + $0x28] sm:$0xff]  ;;  %v256_v11 = vld [vmem:[%s692_s2 + $0x30] sm:$0xff]  ;;  %v455_v12 = vld [vmem:[%s693_s1 + $0x18] sm:$0xff] }
   0x5   :  { %294 = vperm.xlu1 %486, %v252_v3   ;;  %304 = vperm.xlu2 %487, %v254_v7   ;;  %v257_v13 = vld [vmem:[%s692_s2 + $0x38] sm:$0xff]  ;;  %v454_v14 = vld [vmem:[%s693_s1 + $0x10] sm:$0xff]  ;;  %v560_v15 = vld [vmem:[%s694_s0] sm:$0xff] }
   0x6   :  { %v565_v16 = vld [vmem:[%s694_s0 + $0x8] sm:$0xff]  ;;  %v570_v17 = vld [vmem:[%s694_s0 + $0x10] sm:$0xff]  ;;  %v575_v18 = vld [vmem:[%s694_s0 + $0x18] sm:$0xff]  ;;  %v62_v19 = vunpack.c.0.s8 %v560_v15  ;;  %v63_v20 = vunpack.c.1.s8 %v560_v15  ;;  %v64_v47 = vunpack.c.2.s8 %v560_v15  ;;  %v65_v48 = vunpack.c.3.s8 %v560_v15 }
   0x7   :  { %167 = vmatpush.bf16.msra.mxu0 %v458_v4  ;;  %463 = vmatpush.bf16.msra.mxu1 %v458_v4  ;;  %v258_v21 = vld [vmem:[%s692_s2 + $0x40] sm:$0xff]  ;;  %v259_v22 = vld [vmem:[%s692_s2 + $0x48] sm:$0xff]  ;;  %v66_v24 = vunpack.c.0.s8 %v565_v16  ;;  %v67_v25 = vunpack.c.1.s8 %v565_v16  ;;  %v70_v26 = vunpack.c.0.s8 %v570_v17  ;;  %v71_v27 = vunpack.c.1.s8 %v570_v17  ;;  %v260_v32 = vld [vmem:[%s692_s2 + $0x50] sm:$0xff] }
   0x8   :  { %464 = vmatpush.bf16.msra.mxu2 %v458_v4  ;;  %465 = vmatpush.bf16.msra.mxu3 %v458_v4  ;;  %v453_v23 = vld [vmem:[%s693_s1 + $0x8] sm:$0xff]  ;;  %v74_v28 = vunpack.c.0.s8 %v575_v18  ;;  %v75_v29 = vunpack.c.1.s8 %v575_v18  ;;  %v78_v30 = vcvt.s32.f32 %v62_v19  ;;  %v79_v31 = vcvt.s32.f32 %v63_v20  ;;  %v452_v33 = vld [vmem:[%s693_s1] sm:$0xff]  ;;  %v261_v41 = vld [vmem:[%s692_s2 + $0x58] sm:$0xff] }
   0x9   :  { %v82_v34 = vcvt.s32.f32 %v66_v24  ;;  %v83_v35 = vcvt.s32.f32 %v67_v25  ;;  %v86_v36 = vcvt.s32.f32 %v70_v26  ;;  %v87_v37 = vcvt.s32.f32 %v71_v27  ;;  %v262_v42 = vld [vmem:[%s692_s2 + $0x60] sm:$0xff]  ;;  %v263_v46 = vld [vmem:[%s692_s2 + $0x68] sm:$0xff]  ;;  %v264_v49 = vld [vmem:[%s692_s2 + $0x70] sm:$0xff] }
   0xa   :  { %289 = vperm.xlu0 %485, %v251_v5   ;;  %v90_v38 = vcvt.s32.f32 %v74_v28  ;;  %v91_v39 = vcvt.s32.f32 %v75_v29  ;;  %v94_v40 = vpack.c.bf16 %v79_v31, %v78_v30  ;;  %v265_v50 = vld [vmem:[%s692_s2 + $0x78] sm:$0xff]  ;;  %v68_v51 = vunpack.c.2.s8 %v565_v16 }
   0xb   :  { %168 = vmatpush.bf16.msra.mxu0 %v457_v6  ;;  %466 = vmatpush.bf16.msra.mxu1 %v457_v6  ;;  %v96_v43 = vpack.c.bf16 %v83_v35, %v82_v34  ;;  %v98_v44 = vpack.c.bf16 %v87_v37, %v86_v36  ;;  %v69_v52 = vunpack.c.3.s8 %v565_v16  ;;  %v72_v53 = vunpack.c.2.s8 %v570_v17 }
   0xc   :  { %467 = vmatpush.bf16.msra.mxu2 %v457_v6  ;;  %468 = vmatpush.bf16.msra.mxu3 %v457_v6  ;;  %v100_v45 = vpack.c.bf16 %v91_v39, %v90_v38  ;;  %v73_v54 = vunpack.c.3.s8 %v570_v17  ;;  %v76_v55 = vunpack.c.2.s8 %v575_v18  ;;  %v77_v56 = vunpack.c.3.s8 %v575_v18 }
   0xd   :  { %299 = vperm.xlu1 %486, %v253_v8   ;;  %309 = vperm.xlu2 %487, %v255_v10   ;;  %v80_v57 = vcvt.s32.f32 %v64_v47  ;;  %v81_v58 = vcvt.s32.f32 %v65_v48  ;;  %v84_v59 = vcvt.s32.f32 %v68_v51  ;;  %v85_v60 = vcvt.s32.f32 %v69_v52 }
   0xe   :  { %v88_v61 = vcvt.s32.f32 %v72_v53  ;;  %v89_v62 = vcvt.s32.f32 %v73_v54  ;;  %v92_v63 = vcvt.s32.f32 %v76_v55  ;;  %v93_v0 = vcvt.s32.f32 %v77_v56 }
   0xf   :  { %169 = vmatpush.bf16.msra.mxu0 %v456_v9  ;;  %469 = vmatpush.bf16.msra.mxu1 %v456_v9  ;;  %v95_v1 = vpack.c.bf16 %v81_v58, %v80_v57  ;;  %v97_v2 = vpack.c.bf16 %v85_v60, %v84_v59 }
  0x10   :  { %470 = vmatpush.bf16.msra.mxu2 %v456_v9  ;;  %471 = vmatpush.bf16.msra.mxu3 %v456_v9  ;;  %v99_v3 = vpack.c.bf16 %v89_v62, %v88_v61  ;;  %v101_v4 = vpack.c.bf16 %v93_v0, %v92_v63 }
  0x12   :  { %314 = vperm.xlu0 %485, %v256_v11  }
  0x13   :  { %170 = vmatpush.bf16.msra.mxu0 %v455_v12  ;;  %472 = vmatpush.bf16.msra.mxu1 %v455_v12 }
  0x14   :  { %473 = vmatpush.bf16.msra.mxu2 %v455_v12  ;;  %474 = vmatpush.bf16.msra.mxu3 %v455_v12 }
  0x15   :  { %319 = vperm.xlu1 %486, %v257_v13   ;;  %324 = vperm.xlu2 %487, %v258_v21  }
  0x17   :  { %171 = vmatpush.bf16.msra.mxu0 %v454_v14  ;;  %475 = vmatpush.bf16.msra.mxu1 %v454_v14 }
  0x18   :  { %476 = vmatpush.bf16.msra.mxu2 %v454_v14  ;;  %477 = vmatpush.bf16.msra.mxu3 %v454_v14  ;;  %v626_v14 = vld [vmem:[%s695_s3] ss:$0 sm:$0xff] }
  0x1a   :  { %329 = vperm.xlu0 %485, %v259_v22  }
  0x1b   :  { %172 = vmatpush.bf16.msra.mxu0 %v453_v23  ;;  %478 = vmatpush.bf16.msra.mxu1 %v453_v23 }
  0x1c   :  { %479 = vmatpush.bf16.msra.mxu2 %v453_v23  ;;  %480 = vmatpush.bf16.msra.mxu3 %v453_v23 }
  0x1d   :  { %334 = vperm.xlu1 %486, %v260_v32   ;;  %339 = vperm.xlu2 %487, %v261_v41  }
  0x1f   :  { %173 = vmatpush.bf16.msra.mxu0 %v452_v33  ;;  %481 = vmatpush.bf16.msra.mxu1 %v452_v33 }
  0x20   :  { %482 = vmatpush.bf16.msra.mxu2 %v452_v33  ;;  %483 = vmatpush.bf16.msra.mxu3 %v452_v33 }
  0x22   :  { %344 = vperm.xlu0 %485, %v262_v42   ;;  %174 = vmatmul.bf16.vlgmr.msra.gmra.mxu0 %v94_v40 }
  0x23   :  { %184 = vmatmul.bf16.vlgmr.msra.gmra.mxu1 %v96_v43  ;;  %194 = vmatmul.bf16.vlgmr.msra.gmra.mxu2 %v98_v44 }
  0x24   :  { %204 = vmatmul.bf16.vlgmr.msra.gmra.mxu3 %v100_v45 }
  0x25   :  { %349 = vperm.xlu1 %486, %v263_v46   ;;  %354 = vperm.xlu2 %487, %v264_v49  }
  0x2a   :  { %359 = vperm.xlu0 %485, %v265_v50  }
  0x32   :  { %179 = vmatmul.bf16.gmra.mxu0 %v95_v1 }
  0x33   :  { %189 = vmatmul.bf16.gmra.mxu1 %v97_v2  ;;  %199 = vmatmul.bf16.gmra.mxu2 %v99_v3 }
  0x34   :  { %209 = vmatmul.bf16.gmra.mxu3 %v101_v4 }
  0x5f   :  { %v305_v8 = vpop.permute.xlu2 %304 }
  0x67   :  { %v310_v11 = vpop.permute.xlu2 %309 }
  0x6f   :  { %v325_v19 = vpop.permute.xlu2 %324 }
  0x74   :  { %v285_v5 = vpop.permute.xlu0 %284 }
  0x77   :  { %v295_v6 = vpop.permute.xlu1 %294  ;;  %v340_v36 = vpop.permute.xlu2 %339 }
  0x7c   :  { %v290_v7 = vpop.permute.xlu0 %289 }
  0x7f   :  { %v300_v9 = vpop.permute.xlu1 %299  ;;  %v355_v50 = vpop.permute.xlu2 %354 }
  0x84   :  { %v315_v10 = vpop.permute.xlu0 %314 }
  0x87   :  { %v320_v12 = vpop.permute.xlu1 %319 }
  0x8c   :  { %v330_v13 = vpop.permute.xlu0 %329 }
  0x8f   :  { %v335_v22 = vpop.permute.xlu1 %334 }
  0x94   :  { %v345_v23 = vpop.permute.xlu0 %344 }
  0x97   :  { %v350_v37 = vpop.permute.xlu1 %349 }
  0x9c   :  { %v360_v0 = vpop.permute.xlu0 %359 }
  0x9f   :  { %v175_v15 = vpop.f32.mrf.mxu0 }
  0xa0   :  { %v362_v16 = vmul.f32 %v285_v5, %v175_v15  ;;  %v185_v17 = vpop.f32.mrf.mxu1 }
  0xa1   :  { %v366_v18 = vmul.f32 %v305_v8, %v185_v17 }
  0xa2   :  { %v382_v20 = vadd.f32 %v626_v14, %v362_v16 }
  0xa3   :  { %v386_v21 = vadd.f32 %v626_v14, %v366_v18 }
  0xa4   :  { %398 = vst [vmem:[%s696_s4] sm:$0xff] %v382_v20 }
  0xa5   :  { %402 = vst [vmem:[%s696_s4 + $0x20] sm:$0xff] %v386_v21 }
  0xa6   :  { %v195_v24 = vpop.f32.mrf.mxu2 }
  0xa7   :  { %v370_v25 = vmul.f32 %v325_v19, %v195_v24  ;;  %v205_v26 = vpop.f32.mrf.mxu3  ;;  %v177_v27 = vpop.f32.mrf.mxu0 }
  0xa8   :  { %v374_v28 = vmul.f32 %v345_v23, %v205_v26  ;;  %v363_v29 = vmul.f32 %v290_v7, %v177_v27  ;;  %v187_v30 = vpop.f32.mrf.mxu1 }
  0xa9   :  { %v390_v31 = vadd.f32 %v626_v14, %v370_v25  ;;  %v367_v32 = vmul.f32 %v310_v11, %v187_v30 }
  0xaa   :  { %v394_v33 = vadd.f32 %v626_v14, %v374_v28  ;;  %v383_v34 = vadd.f32 %v626_v14, %v363_v29 }
  0xab   :  { %406 = vst [vmem:[%s696_s4 + $0x40] sm:$0xff] %v390_v31  ;;  %v387_v35 = vadd.f32 %v626_v14, %v367_v32 }
  0xac   :  { %410 = vst [vmem:[%s696_s4 + $0x60] sm:$0xff] %v394_v33 }
  0xad   :  { %399 = vst [vmem:[%s696_s4 + $0x8] sm:$0xff] %v383_v34 }
  0xae   :  { %403 = vst [vmem:[%s696_s4 + $0x28] sm:$0xff] %v387_v35  ;;  %v197_v38 = vpop.f32.mrf.mxu2 }
  0xaf   :  { %v371_v39 = vmul.f32 %v330_v13, %v197_v38  ;;  %v207_v40 = vpop.f32.mrf.mxu3  ;;  %v180_v41 = vpop.f32.mrf.mxu0 }
  0xb0   :  { %v375_v42 = vmul.f32 %v350_v37, %v207_v40  ;;  %v364_v43 = vmul.f32 %v295_v6, %v180_v41  ;;  %v190_v44 = vpop.f32.mrf.mxu1 }
  0xb1   :  { %v391_v45 = vadd.f32 %v626_v14, %v371_v39  ;;  %v368_v46 = vmul.f32 %v315_v10, %v190_v44 }
  0xb2   :  { %v395_v47 = vadd.f32 %v626_v14, %v375_v42  ;;  %v384_v48 = vadd.f32 %v626_v14, %v364_v43 }
  0xb3   :  { %407 = vst [vmem:[%s696_s4 + $0x48] sm:$0xff] %v391_v45  ;;  %v388_v49 = vadd.f32 %v626_v14, %v368_v46 }
  0xb4   :  { %411 = vst [vmem:[%s696_s4 + $0x68] sm:$0xff] %v395_v47 }
  0xb5   :  { %400 = vst [vmem:[%s696_s4 + $0x10] sm:$0xff] %v384_v48 }
  0xb6   :  { %404 = vst [vmem:[%s696_s4 + $0x30] sm:$0xff] %v388_v49  ;;  %v200_v51 = vpop.f32.mrf.mxu2 }
  0xb7   :  { %v372_v52 = vmul.f32 %v335_v22, %v200_v51  ;;  %v210_v53 = vpop.f32.mrf.mxu3  ;;  %v182_v54 = vpop.f32.mrf.mxu0 }
  0xb8   :  { %v376_v55 = vmul.f32 %v355_v50, %v210_v53  ;;  %v365_v56 = vmul.f32 %v300_v9, %v182_v54  ;;  %v192_v57 = vpop.f32.mrf.mxu1 }
  0xb9   :  { %v392_v58 = vadd.f32 %v626_v14, %v372_v52  ;;  %v369_v59 = vmul.f32 %v320_v12, %v192_v57 }
  0xba   :  { %v396_v60 = vadd.f32 %v626_v14, %v376_v55  ;;  %v385_v61 = vadd.f32 %v626_v14, %v365_v56 }
  0xbb   :  { %408 = vst [vmem:[%s696_s4 + $0x50] sm:$0xff] %v392_v58  ;;  %v389_v62 = vadd.f32 %v626_v14, %v369_v59 }
  0xbc   :  { %412 = vst [vmem:[%s696_s4 + $0x70] sm:$0xff] %v396_v60 }
  0xbd   :  { %401 = vst [vmem:[%s696_s4 + $0x18] sm:$0xff] %v385_v61 }
  0xbe   :  { %405 = vst [vmem:[%s696_s4 + $0x38] sm:$0xff] %v389_v62  ;;  %v202_v63 = vpop.f32.mrf.mxu2 }
  0xbf   :  { %v373_v1 = vmul.f32 %v340_v36, %v202_v63  ;;  %v212_v2 = vpop.f32.mrf.mxu3 }
  0xc0   :  { %v377_v3 = vmul.f32 %v360_v0, %v212_v2 }
  0xc1   :  { %v393_v4 = vadd.f32 %v626_v14, %v373_v1 }
  0xc2   :  { %v397_v5 = vadd.f32 %v626_v14, %v377_v3 }
  0xc3   :  { %409 = vst [vmem:[%s696_s4 + $0x58] sm:$0xff] %v393_v4 }
  0xc4   :  { %413 = vst [vmem:[%s696_s4 + $0x78] sm:$0xff] %v397_v5 }

</bundles_post_ra>
